<compile_context>
chip_gen: v5e
topology: v5e:2x2
jax: 0.10.0
libtpu: 0.0.40
codegen_flags: <defaults>
</compile_context>

<pallas_src>
import jax
import jax.numpy as jnp
from jax.experimental import pallas as pl
from jax.experimental.pallas import tpu as pltpu

NEG_SLOPE = 0.01  # nn.LeakyReLU default negative_slope


def _leaky_relu(x):
    # one vmul + one vmax per vreg (no predicate + vselect)
    return jnp.maximum(x, NEG_SLOPE * x)


def mlp_kernel(x_ref, w1_ref, b1_ref, w2_ref, b2_ref, w3_ref, b3_ref, o_ref):
    # Feature-major layout: x_ref (14, tb), w* (out, in), b* (out, 1),
    # o_ref (10, tb).  Every tile is lane-dense (tb on the lane axis).

    # Layer 1: Linear(14 -> 30) + LeakyReLU   (dropout: identity at inference)
    h = jnp.dot(w1_ref[...], x_ref[...], preferred_element_type=jnp.float32)
    h = _leaky_relu(h + b1_ref[...])

    # Layer 2: Linear(30 -> 15) + LeakyReLU   (dropout: identity at inference)
    h = jnp.dot(w2_ref[...], h.astype(w2_ref.dtype),
                preferred_element_type=jnp.float32)
    h = _leaky_relu(h + b2_ref[...])

    # Layer 3: Linear(15 -> 10)
    o = jnp.dot(w3_ref[...], h.astype(w3_ref.dtype),
                preferred_element_type=jnp.float32)
    o_ref[...] = (o + b3_ref[...]).astype(o_ref.dtype)


def _round_up(x, m):
    return ((x + m - 1) // m) * m


def mlp_forward_t(x_t, params, *, block_batch=8192, out_dtype=jnp.float32):
    """Preferred feature-major entry point.

    x_t: (i_dim, B) activations (f32 or bf16, as produced upstream).
    params: torch-native weights w* (out, in), biases b* (out, 1), f32.
    Returns (o_dim, B) in `out_dtype`.
    """
    w1, b1, w2, b2, w3, b3 = (params["w1"], params["b1"], params["w2"],
                              params["b2"], params["w3"], params["b3"])
    i_dim, B = x_t.shape
    h1, h2, o_dim = w1.shape[0], w2.shape[0], w3.shape[0]

    # Weights are tiny (<10 KB total): cast them to the streamed activation
    # dtype so the MXU sees a uniform input dtype.  Biases / accumulation f32.
    wdt = x_t.dtype
    w1, w2, w3 = (w.astype(wdt) for w in (w1, w2, w3))

    # Batch tile on the lane axis: multiple of 128 unless a single block covers
    # the whole batch.  Mid-size batches are split into >= 2 grid steps so both
    # TensorCores get work on v7x (the batch grid is the megacore axis).
    block_batch = max(128, _round_up(block_batch, 128))
    if B <= 256:
        tb = B                                   # single block: last dim == full dim
    elif B <= 2 * block_batch:
        tb = _round_up(pl.cdiv(B, 2), 128)       # >= 2 grid steps
    else:
        tb = block_batch
    grid = (pl.cdiv(B, tb),)
    # NOTE: no padding of x.  If B % tb != 0 the final block reads undefined
    # trailing columns; batch columns are independent, and Pallas clips the
    # out-of-bounds part of the output writeback, so valid columns are exact.

    itemsize = lambda a: jnp.dtype(a.dtype).itemsize
    flops = 2 * B * (i_dim * h1 + h1 * h2 + h2 * o_dim)
    bytes_accessed = (
        B * i_dim * itemsize(x_t)
        + B * o_dim * jnp.dtype(out_dtype).itemsize
        + sum(a.size * itemsize(a) for a in (w1, b1, w2, b2, w3, b3))
    )
    cost = pl.CostEstimate(flops=flops, transcendentals=0,
                           bytes_accessed=bytes_accessed)

    # Weights/biases: full blocks with constant index_map -> VMEM-resident.
    const = lambda shape: pl.BlockSpec(shape, lambda i: (0, 0))

    out_t = pl.pallas_call(
        mlp_kernel,
        out_shape=jax.ShapeDtypeStruct((o_dim, B), out_dtype),
        grid=grid,
        in_specs=[
            pl.BlockSpec((i_dim, tb), lambda i: (0, i)),   # streamed, lane-dense
            const(w1.shape), const(b1.shape),
            const(w2.shape), const(b2.shape),
            const(w3.shape), const(b3.shape),
        ],
        out_specs=pl.BlockSpec((o_dim, tb), lambda i: (0, i)),
        compiler_params=pltpu.CompilerParams(
            dimension_semantics=("parallel",)),
        cost_estimate=cost,
    )(x_t, w1, b1, w2, b2, w3, b3)
    return out_t


def mlp_forward(x, params, *, block_batch=8192, out_dtype=jnp.float32):
    """Batch-major convenience wrapper: x (B, i_dim) -> (B, o_dim).

    NOTE: the transposes below are one extra HBM pass over x and the (tiny)
    output; the preferred path is for the producer to emit the (i_dim, B)
    layout and call mlp_forward_t directly.
    """
    out_t = mlp_forward_t(jnp.transpose(x), params,
                          block_batch=block_batch, out_dtype=out_dtype)
    return jnp.transpose(out_t)


def init_params(key, i_dim=14, h_dim=(30, 15), o_dim=10):
    """Matches MLP.initialize_weights(init_type='uniform'):
       weights ~ U(0,1) stored torch-native (out, in), biases = 0.01 as (out, 1)."""
    dims = [i_dim, *h_dim, o_dim]
    keys = jax.random.split(key, len(dims) - 1)
    params = {}
    for idx, (d_in, d_out) in enumerate(zip(dims[:-1], dims[1:]), start=1):
        w = jax.random.uniform(keys[idx - 1], (d_out, d_in), dtype=jnp.float32)
        b = jnp.full((d_out, 1), 0.01, dtype=jnp.float32)
        params[f"w{idx}"] = w
        params[f"b{idx}"] = b
    return params


def mlp_reference_t(x_t, params):
    """Pure-JAX reference in the same feature-major layout."""
    h = _leaky_relu(params["w1"] @ x_t + params["b1"])
    h = _leaky_relu(params["w2"] @ h + params["b2"])
    return params["w3"] @ h + params["b3"]


if __name__ == "__main__":
    key = jax.random.PRNGKey(0)
    k_x, k_x2, k_p = jax.random.split(key, 3)

    I_DIM, O_DIM = 14, 10
    params = init_params(k_p, i_dim=I_DIM, h_dim=(30, 15), o_dim=O_DIM)

    # Small single-block case (preferred feature-major layout).
    B = 8
    x_t = jax.random.normal(k_x, (I_DIM, B), dtype=jnp.float32)
    out_t = jax.block_until_ready(mlp_forward_t(x_t, params))
    ref_t = mlp_reference_t(x_t, params)
    assert out_t.shape == (O_DIM, B), out_t.shape
    assert jnp.allclose(out_t, ref_t, atol=1e-4, rtol=1e-5), "mismatch vs reference"

    # Multi-step grid with a clipped partial tail block (B not a tile multiple),
    # via the batch-major convenience wrapper.
    B2 = 300
    x2 = jax.random.normal(k_x2, (B2, I_DIM), dtype=jnp.float32)
    out2 = jax.block_until_ready(mlp_forward(x2, params, block_batch=128))
    ref2 = jnp.transpose(mlp_reference_t(jnp.transpose(x2), params))
    assert out2.shape == (B2, O_DIM), out2.shape
    assert jnp.allclose(out2, ref2, atol=1e-4, rtol=1e-5), "mismatch (tiled)"

    # bf16 streaming path: x already bf16 upstream (no wrapper cast of f32 x);
    # f32 MXU accumulation, bf16 output writeback.  Loose tolerance vs f32 ref.
    x2t_bf16 = jnp.transpose(x2).astype(jnp.bfloat16)
    out_bf16 = jax.block_until_ready(
        mlp_forward_t(x2t_bf16, params, block_batch=128, out_dtype=jnp.bfloat16))
    assert out_bf16.shape == (O_DIM, B2), out_bf16.shape
    out_bf16_f32 = out_bf16.astype(jnp.float32)
    assert bool(jnp.all(jnp.isfinite(out_bf16_f32)))
    assert jnp.allclose(out_bf16_f32, jnp.transpose(ref2), rtol=5e-2, atol=1.0), \
        "bf16 path out of tolerance"

    print("KERNEL_OK")
</pallas_src>

<mosaic_0001>
module attributes {stable_mosaic.version = 11 : i64} {
  func.func @mlp_kernel(%arg0: i32, %arg1: memref<14x8xf32, #tpu.memory_space<vmem>>, %arg2: memref<30x14xf32, #tpu.memory_space<vmem>>, %arg3: memref<30x1xf32, #tpu.memory_space<vmem>>, %arg4: memref<15x30xf32, #tpu.memory_space<vmem>>, %arg5: memref<15x1xf32, #tpu.memory_space<vmem>>, %arg6: memref<10x15xf32, #tpu.memory_space<vmem>>, %arg7: memref<10x1xf32, #tpu.memory_space<vmem>>, %arg8: memref<10x8xf32, #tpu.memory_space<vmem>>) attributes {dimension_semantics = [#tpu.dimension_semantics<parallel>], iteration_bounds = array<i64: 1>, scalar_prefetch = 0 : i64, scratch_operands = 0 : i64, tpu.core_type = #tpu.core_type<tc>, window_params = [{transform_indices = @transform_0, window_bounds = array<i64: 14, 8>}, {pipeline_mode = #tpu.pipeline_mode<synchronous>, transform_indices = @transform_1, window_bounds = array<i64: 30, 14>}, {pipeline_mode = #tpu.pipeline_mode<synchronous>, transform_indices = @transform_2, window_bounds = array<i64: 30, 1>}, {pipeline_mode = #tpu.pipeline_mode<synchronous>, transform_indices = @transform_3, window_bounds = array<i64: 15, 30>}, {pipeline_mode = #tpu.pipeline_mode<synchronous>, transform_indices = @transform_4, window_bounds = array<i64: 15, 1>}, {pipeline_mode = #tpu.pipeline_mode<synchronous>, transform_indices = @transform_5, window_bounds = array<i64: 10, 15>}, {pipeline_mode = #tpu.pipeline_mode<synchronous>, transform_indices = @transform_6, window_bounds = array<i64: 10, 1>}, {transform_indices = @transform_7, window_bounds = array<i64: 10, 8>}]} {
    %c0 = arith.constant 0 : index
    %c0_0 = arith.constant 0 : index
    %0 = vector.load %arg2[%c0, %c0_0] : memref<30x14xf32, #tpu.memory_space<vmem>>, vector<30x14xf32>
    %c0_1 = arith.constant 0 : index
    %c0_2 = arith.constant 0 : index
    %1 = vector.load %arg1[%c0_1, %c0_2] : memref<14x8xf32, #tpu.memory_space<vmem>>, vector<14x8xf32>
    %cst = arith.constant dense<0.000000e+00> : vector<30x8xf32>
    %2 = tpu.matmul %0, %1, %cst {dimension_numbers = #tpu.dot_dimension_numbers<[1], [0], [0], [1], [0, 0, 1, 1], [], []>} : vector<30x14xf32>, vector<14x8xf32>, vector<30x8xf32> -> vector<30x8xf32>
    %c0_3 = arith.constant 0 : index
    %c0_4 = arith.constant 0 : index
    %3 = vector.load %arg3[%c0_3, %c0_4] : memref<30x1xf32, #tpu.memory_space<vmem>>, vector<30x1xf32>
    %4 = vector.broadcast %3 : vector<30x1xf32> to vector<30x8xf32>
    %5 = arith.addf %2, %4 : vector<30x8xf32>
    %cst_5 = arith.constant 0.00999999977 : f32
    %6 = vector.broadcast %cst_5 : f32 to vector<30x8xf32>
    %7 = arith.mulf %6, %5 : vector<30x8xf32>
    %8 = arith.maximumf %5, %7 : vector<30x8xf32>
    %c0_6 = arith.constant 0 : index
    %c0_7 = arith.constant 0 : index
    %9 = vector.load %arg4[%c0_6, %c0_7] : memref<15x30xf32, #tpu.memory_space<vmem>>, vector<15x30xf32>
    %cst_8 = arith.constant dense<0.000000e+00> : vector<15x8xf32>
    %10 = tpu.matmul %9, %8, %cst_8 {dimension_numbers = #tpu.dot_dimension_numbers<[1], [0], [0], [1], [0, 0, 1, 1], [], []>} : vector<15x30xf32>, vector<30x8xf32>, vector<15x8xf32> -> vector<15x8xf32>
    %c0_9 = arith.constant 0 : index
    %c0_10 = arith.constant 0 : index
    %11 = vector.load %arg5[%c0_9, %c0_10] : memref<15x1xf32, #tpu.memory_space<vmem>>, vector<15x1xf32>
    %12 = vector.broadcast %11 : vector<15x1xf32> to vector<15x8xf32>
    %13 = arith.addf %10, %12 : vector<15x8xf32>
    %cst_11 = arith.constant 0.00999999977 : f32
    %14 = vector.broadcast %cst_11 : f32 to vector<15x8xf32>
    %15 = arith.mulf %14, %13 : vector<15x8xf32>
    %16 = arith.maximumf %13, %15 : vector<15x8xf32>
    %c0_12 = arith.constant 0 : index
    %c0_13 = arith.constant 0 : index
    %17 = vector.load %arg6[%c0_12, %c0_13] : memref<10x15xf32, #tpu.memory_space<vmem>>, vector<10x15xf32>
    %cst_14 = arith.constant dense<0.000000e+00> : vector<10x8xf32>
    %18 = tpu.matmul %17, %16, %cst_14 {dimension_numbers = #tpu.dot_dimension_numbers<[1], [0], [0], [1], [0, 0, 1, 1], [], []>} : vector<10x15xf32>, vector<15x8xf32>, vector<10x8xf32> -> vector<10x8xf32>
    %c0_15 = arith.constant 0 : index
    %c0_16 = arith.constant 0 : index
    %19 = vector.load %arg7[%c0_15, %c0_16] : memref<10x1xf32, #tpu.memory_space<vmem>>, vector<10x1xf32>
    %20 = vector.broadcast %19 : vector<10x1xf32> to vector<10x8xf32>
    %21 = arith.addf %18, %20 : vector<10x8xf32>
    %c0_17 = arith.constant 0 : index
    %c0_18 = arith.constant 0 : index
    %22 = vector.load %arg8[%c0_17, %c0_18] : memref<10x8xf32, #tpu.memory_space<vmem>>, vector<10x8xf32>
    tpu.vector_store %arg8[%c0_17, %c0_18], %21 {strides = array<i32>} : memref<10x8xf32, #tpu.memory_space<vmem>>, vector<10x8xf32>,
    return
  }
  func.func @transform_0(%arg0: i32) -> (i32, i32) {
    %c0_i32 = arith.constant 0 : i32
    %c0_i32_0 = arith.constant 0 : i32
    return %c0_i32, %arg0 : i32, i32
  }
  func.func @transform_1(%arg0: i32) -> (i32, i32) {
    %c0_i32 = arith.constant 0 : i32
    %c0_i32_0 = arith.constant 0 : i32
    %c0_i32_1 = arith.constant 0 : i32
    return %c0_i32, %c0_i32_0 : i32, i32
  }
  func.func @transform_2(%arg0: i32) -> (i32, i32) {
    %c0_i32 = arith.constant 0 : i32
    %c0_i32_0 = arith.constant 0 : i32
    %c0_i32_1 = arith.constant 0 : i32
    return %c0_i32, %c0_i32_0 : i32, i32
  }
  func.func @transform_3(%arg0: i32) -> (i32, i32) {
    %c0_i32 = arith.constant 0 : i32
    %c0_i32_0 = arith.constant 0 : i32
    %c0_i32_1 = arith.constant 0 : i32
    return %c0_i32, %c0_i32_0 : i32, i32
  }
  func.func @transform_4(%arg0: i32) -> (i32, i32) {
    %c0_i32 = arith.constant 0 : i32
    %c0_i32_0 = arith.constant 0 : i32
    %c0_i32_1 = arith.constant 0 : i32
    return %c0_i32, %c0_i32_0 : i32, i32
  }
  func.func @transform_5(%arg0: i32) -> (i32, i32) {
    %c0_i32 = arith.constant 0 : i32
    %c0_i32_0 = arith.constant 0 : i32
    %c0_i32_1 = arith.constant 0 : i32
    return %c0_i32, %c0_i32_0 : i32, i32
  }
  func.func @transform_6(%arg0: i32) -> (i32, i32) {
    %c0_i32 = arith.constant 0 : i32
    %c0_i32_0 = arith.constant 0 : i32
    %c0_i32_1 = arith.constant 0 : i32
    return %c0_i32, %c0_i32_0 : i32, i32
  }
  func.func @transform_7(%arg0: i32) -> (i32, i32) {
    %c0_i32 = arith.constant 0 : i32
    %c0_i32_0 = arith.constant 0 : i32
    return %c0_i32, %arg0 : i32, i32
  }
}

</mosaic_0001>

<bundles_post_ra>
// kernel: tpu_custom_call.1
= control target key start
LH: loop header
LB: loop body
LE: loop exit
PB: predicated region body
PF: predicated region fallthrough
CT: control target
= control target key end

     0   :  { %vm69_vm0 = vcmask 1045504   ;;  %v234_v2 = vmov 0   ;;  %vm56_vm1 = vcmask 113664   ;;  %vm124_vm2 = vcmask 244736   ;;  %s342_s0 = inlined_call_operand.vmem [shape: f32[14,8], index: 0, kind: input, shape index: {}]   ;;  %s343_s1 = inlined_call_operand.vmem [shape: f32[30,14], index: 1, kind: input, shape index: {}]   ;;  %s344_s2 = inlined_call_operand.vmem [shape: f32[30,1], index: 2, kind: input, shape index: {}]   ;;  %s345_s6 = inlined_call_operand.vmem [shape: f32[10,1], index: 6, kind: input, shape index: {}]   ;;  %s346_s4 = inlined_call_operand.vmem [shape: f32[15,1], index: 4, kind: input, shape index: {}]   ;;  %s347_s3 = inlined_call_operand.vmem [shape: f32[15,30], index: 3, kind: input, shape index: {}]   ;;  %s348_s5 = inlined_call_operand.vmem [shape: f32[10,15], index: 5, kind: input, shape index: {}]   ;;  %s349_s7 = inlined_call_operand.vmem [shape: f32[10,8], index: 7, kind: output, shape index: {}]  }
   0x1   :  { %v31_v0 = vld [vmem:[%s342_s0 + $0x8] sm:$0x3f]  ;;  %v30_v1 = vld [vmem:[%s342_s0] sm:$0xff]  ;;  %231 = vset.pattern.permute.xlu0 %v234_v2  ;;  %232 = vset.pattern.permute.xlu1 %v234_v2  ;;  %v35_v4 = vld [vmem:[%s344_s2 + $0x18] sm:$0x3f]  ;;  %vm182_vm3 = vcmask 1046528  }
   0x2   :  { %228 = vmatpush.msk.msra.mxu3 %vm69_vm0, %v31_v0  ;;  %v27_v3 = vld [vmem:[%s343_s1 + $0x8] sm:$0xff]  ;;  %217 = vmatpush.msk.msra.mxu0 %vm69_vm0, %v31_v0  ;;  %v26_v6 = vld [vmem:[%s343_s1] sm:$0xff]  ;;  %v34_v7 = vld [vmem:[%s344_s2 + $0x10] sm:$0xff]  ;;  %vm175_vm4 = vcmask 121856   ;;  %vm209_vm5 = vcmask 64512   ;;  %vm211_vm6 = vcmask 58368  }
   0x3   :  { %v33_v5 = vld [vmem:[%s344_s2 + $0x8] sm:$0xff]  ;;  %53 = vperm.xlu0 %231, %v35_v4   ;;  %233 = vset.pattern.permute.xlu2 %v234_v2  ;;  %v32_v8 = vld [vmem:[%s344_s2] sm:$0xff]  ;;  %v28_v9 = vld [vmem:[%s343_s1 + $0x10] sm:$0xff] }
   0x4   :  { %43 = vperm.xlu1 %232, %v33_v5   ;;  %229 = vmatpush.msra.mxu3 %v30_v1  ;;  %v163_v10 = vld [vmem:[%s345_s6] sm:$0xff]  ;;  %v164_v11 = vld [vmem:[%s345_s6 + $0x8] sm:$0x3]  ;;  %v29_v12 = vld [vmem:[%s343_s1 + $0x18] sm:$0x3f] }
   0x5   :  { %88 = vmatpush.msra.mxu0 %v30_v1  ;;  %219 = vmatmul.msk.f32.vlgmr.msra.gmra.mxu3 %vm56_vm1, %v27_v3  ;;  %v113_v15 = vld [vmem:[%s346_s4 + $0x8] sm:$0x7f]  ;;  %v112_v18 = vld [vmem:[%s346_s4] sm:$0xff] }
   0x6   :  { %218 = vmatmul.msk.f32.vlgmr.msra.gmra.mxu0 %vm56_vm1, %v26_v6  ;;  %121 = vperm.xlu2 %233, %v113_v15   ;;  %v110_v35 = vld [vmem:[%s347_s3] sm:$0xff]  ;;  %v111_v36 = vld [vmem:[%s347_s3 + $0x8] sm:$0x7f] }
   0x7   :  { %v161_v47 = vld [vmem:[%s348_s5] sm:$0xff]  ;;  %v162_v48 = vld [vmem:[%s348_s5 + $0x8] sm:$0x3] }
   0xb   :  { %48 = vperm.xlu0 %231, %v34_v7  }
   0xc   :  { %38 = vperm.xlu1 %232, %v32_v8  }
   0xd   :  { %220 = vmatmul.msk.f32.gmra.mxu3 %vm56_vm1, %v28_v9 }
   0xe   :  { %116 = vperm.xlu2 %233, %v112_v18  }
  0x13   :  { %167 = vperm.xlu0 %231, %v163_v10  }
  0x14   :  { %172 = vperm.xlu1 %232, %v164_v11  }
  0x15   :  { %221 = vmatmul.msk.f32.gmra.mxu3 %vm56_vm1, %v29_v12 }
  0x60   :  { %v122_v37 = vpop.permute.xlu2 %121 }
  0x68   :  { %v117_v39 = vpop.permute.xlu2 %116 }
  0x75   :  { %v54_v14 = vpop.permute.xlu0 %53 }
  0x76   :  { %v44_v16 = vpop.permute.xlu1 %43 }
  0x7d   :  { %v49_v19 = vpop.permute.xlu0 %48 }
  0x7e   :  { %v39_v25 = vpop.permute.xlu1 %38 }
  0x83   :  { %v90_v21 = vpop.f32.mrf.mxu0 }
  0x84   :  { %v91_v27 = vadd.f32 %v90_v21, %v39_v25 }
  0x85   :  { %v168_v49 = vpop.permute.xlu0 %167 }
  0x86   :  { %v102_v31 = vmul.f32 0.01, %v91_v27  ;;  %v173_v52 = vpop.permute.xlu1 %172 }
  0x88   :  { %v93_v13 = vpop.f32.mrf.mxu3  ;;  %v106_v34 = vmax.f32 %v91_v27, %v102_v31 }
  0x89   :  { %v94_v23 = vadd.f32 %v93_v13, %v44_v16 }
  0x8b   :  { %v103_v29 = vmul.f32 0.01, %v94_v23 }
  0x8d   :  { %v107_v33 = vmax.f32 %v94_v23, %v103_v29 }
  0x90   :  { %v96_v17 = vpop.f32.mrf.mxu3 }
  0x91   :  { %v97_v20 = vadd.f32 %v96_v17, %v49_v19 }
  0x93   :  { %v104_v26 = vmul.f32 0.01, %v97_v20 }
  0x95   :  { %v108_v32 = vmax.f32 %v97_v20, %v104_v26 }
  0x98   :  { %v99_v22 = vpop.f32.mrf.mxu3 }
  0x99   :  { %v100_v24 = vadd.f32 %v99_v22, %v54_v14 }
  0x9b   :  { %v105_v28 = vmul.f32 0.01, %v100_v24 }
  0x9d   :  { %v109_v30 = vmax.f32 %v100_v24, %v105_v28 }
  0x9f   :  { %222 = vmatpush.msk.msra.mxu1 %vm69_vm0, %v109_v30 }
  0xa1   :  { %147 = vmatpush.msra.mxu1 %v108_v32 }
  0xa3   :  { %148 = vmatpush.msra.mxu1 %v107_v33 }
  0xa5   :  { %149 = vmatpush.msra.mxu1 %v106_v34 }
  0xa6   :  { %223 = vmatmul.msk.f32.vlgmr.msra.gmra.mxu1 %vm124_vm2, %v110_v35 }
  0xae   :  { %224 = vmatmul.msk.f32.gmra.mxu1 %vm124_vm2, %v111_v36 }
 0x123   :  { %v151_v38 = vpop.f32.mrf.mxu1 }
 0x124   :  { %v152_v40 = vadd.f32 %v151_v38, %v117_v39 }
 0x126   :  { %v157_v43 = vmul.f32 0.01, %v152_v40 }
 0x128   :  { %v159_v46 = vmax.f32 %v152_v40, %v157_v43 }
 0x12b   :  { %v154_v41 = vpop.f32.mrf.mxu1 }
 0x12c   :  { %v155_v42 = vadd.f32 %v154_v41, %v122_v37 }
 0x12e   :  { %v158_v44 = vmul.f32 0.01, %v155_v42 }
 0x130   :  { %v160_v45 = vmax.f32 %v155_v42, %v158_v44 }
 0x132   :  { %225 = vmatpush.msk.msra.mxu2 %vm182_vm3, %v160_v45 }
 0x134   :  { %201 = vmatpush.msra.mxu2 %v159_v46 }
 0x135   :  { %226 = vmatmul.msk.f32.vlgmr.msra.gmra.mxu2 %vm175_vm4, %v161_v47 }
 0x13d   :  { %227 = vmatmul.msk.f32.gmra.mxu2 %vm175_vm4, %v162_v48 }
 0x1b8   :  { %v203_v50 = vpop.f32.mrf.mxu2 }
 0x1b9   :  { %v204_v51 = vadd.f32 %v203_v50, %v168_v49 }
 0x1bb   :  { %210 = vst.msk [vmem:[%s349_s7] sm:$0xff] %vm209_vm5, %v204_v51 }
 0x1c0   :  { %v206_v53 = vpop.f32.mrf.mxu2 }
 0x1c1   :  { %v207_v54 = vadd.f32 %v206_v53, %v173_v52 }
 0x1c3   :  { %212 = vst.msk [vmem:[%s349_s7 + $0x8] sm:$0x3] %vm211_vm6, %v207_v54 }

</bundles_post_ra>
